<compile_context>
chip_gen: v5e
topology: v5e:2x2
jax: 0.10.0
libtpu: 0.0.40
codegen_flags: <defaults>
</compile_context>

<pallas_src>
import functools

import jax
import jax.numpy as jnp
from jax.experimental import pallas as pl
from jax.experimental.pallas import tpu as pltpu

EPS = 1e-5  # HF CLIP layer_norm_eps
VMEM_LIMIT_BYTES = 48 * 1024 * 1024  # safe on v5e/v6e (128 MiB) and v7x (64 MiB)


# ----------------------------- in-kernel helpers -----------------------------
def _layernorm(x, w, b):
    mu = jnp.mean(x, axis=-1, keepdims=True)
    xc = x - mu
    var = jnp.mean(xc * xc, axis=-1, keepdims=True)
    inv = jax.lax.rsqrt(var + EPS)
    return xc * inv * w + b


# ----------------------- patch-embedding matmul kernel -----------------------
# Conv2d(3, D, kernel=p, stride=p, bias=False) == im2col + matmul.
def _patch_embed_kernel(p_ref, w_ref, o_ref):
    o_ref[...] = jnp.dot(p_ref[...], w_ref[...], preferred_element_type=jnp.float32)


def patch_embed(patches, w, *, tm=256):
    # patches: (B*N, C*p*p), w: (C*p*p, D)  -- kept f32 (negligible FLOPs).
    M, K = patches.shape
    D = w.shape[1]
    # Pad K up to a lane multiple so MXU feeds / loads are unmasked.
    Kp = ((K + 127) // 128) * 128
    if Kp != K:
        patches = jnp.pad(patches, ((0, 0), (0, Kp - K)))
        w = jnp.pad(w, ((0, Kp - K), (0, 0)))
    tm = min(tm, M)
    return pl.pallas_call(
        _patch_embed_kernel,
        grid=(pl.cdiv(M, tm),),
        out_shape=jax.ShapeDtypeStruct((M, D), jnp.float32),
        in_specs=[
            pl.BlockSpec((tm, Kp), lambda i: (i, 0)),
            pl.BlockSpec((Kp, D), lambda i: (0, 0)),
        ],
        out_specs=pl.BlockSpec((tm, D), lambda i: (i, 0)),
        compiler_params=pltpu.CompilerParams(
            dimension_semantics=("parallel",),
            vmem_limit_bytes=VMEM_LIMIT_BYTES),
    )(patches, w)


# ------------------- fused CLIP encoder stack (all layers) --------------------
# grid = (B, L): batch is 'parallel', layer axis is 'arbitrary'.  The output
# block (1,S,D) has a b-only index_map, so it stays resident in VMEM across the
# whole L axis and acts as the residual-stream accumulator; per-layer weights
# are streamed (and prefetched) block-by-block along L.
def _encoder_stack_kernel(x_ref, pre_w, pre_b,
                          ln1w, ln1b, wqkv, bqkv, wo, bo,
                          ln2w, ln2b, w1, b1, w2, b2,
                          o_ref, *, num_heads, scale):
    l = pl.program_id(1)

    # Fold the vision-model pre-LayerNorm into layer 0; initializes the
    # VMEM-resident residual stream.
    @pl.when(l == 0)
    def _():
        o_ref[0] = _layernorm(x_ref[0], pre_w[...], pre_b[...])

    x = o_ref[0]                                    # (S, D) float32
    S, D = x.shape
    hd = D // num_heads

    # --- self attention (pre-LN), fused QKV projection ---
    h = _layernorm(x, ln1w[0], ln1b[0])
    qkv = jnp.dot(h.astype(jnp.bfloat16), wqkv[0],
                  preferred_element_type=jnp.float32) + bqkv[0]     # (S, 3D)
    q = qkv[:, :D] * scale
    k = qkv[:, D:2 * D]
    v = qkv[:, 2 * D:]

    heads = []
    for hh in range(num_heads):
        lo = hh * hd
        qh = q[:, lo:lo + hd].astype(jnp.bfloat16)
        kh = k[:, lo:lo + hd].astype(jnp.bfloat16)
        vh = v[:, lo:lo + hd].astype(jnp.bfloat16)
        sc = jax.lax.dot_general(qh, kh, (((1,), (1,)), ((), ())),
                                 preferred_element_type=jnp.float32)  # (S, S)
        sc = sc - jnp.max(sc, axis=-1, keepdims=True)
        e = jnp.exp(sc)
        p = e * pl.reciprocal(jnp.sum(e, axis=-1, keepdims=True), approx=True)
        heads.append(jnp.dot(p.astype(jnp.bfloat16), vh,
                             preferred_element_type=jnp.float32))     # (S, hd)
    attn = jnp.concatenate(heads, axis=-1)                            # (S, D)
    x = x + jnp.dot(attn.astype(jnp.bfloat16), wo[0],
                    preferred_element_type=jnp.float32) + bo[0]

    # --- MLP (pre-LN, QuickGELU) ---
    h2 = _layernorm(x, ln2w[0], ln2b[0])
    f = jnp.dot(h2.astype(jnp.bfloat16), w1[0],
                preferred_element_type=jnp.float32) + b1[0]
    f = f * (1.0 / (1.0 + jnp.exp(-1.702 * f)))       # quick_gelu (sigmoid on EUP)
    x = x + jnp.dot(f.astype(jnp.bfloat16), w2[0],
                    preferred_element_type=jnp.float32) + b2[0]

    o_ref[0] = x


def encoder_stack(x, params, num_heads):
    B, S, D = x.shape
    layers = params["layers"]
    L = len(layers)
    hd = D // num_heads
    F = layers[0]["w1"].shape[-1]
    scale = float(hd) ** -0.5

    def stack(name, shape, dtype=jnp.float32):
        return jnp.stack([lp[name].reshape(shape) for lp in layers]).astype(dtype)

    # Stack per-layer weights along a leading L axis; matmul weights in bf16
    # (halves weight DMA; accumulation stays f32 in-kernel).
    ln1w = stack("ln1_w", (1, D));  ln1b = stack("ln1_b", (1, D))
    wqkv = jnp.stack([jnp.concatenate([lp["Wq"], lp["Wk"], lp["Wv"]], axis=1)
                      for lp in layers]).astype(jnp.bfloat16)        # (L, D, 3D)
    bqkv = jnp.stack([jnp.concatenate([lp["bq"], lp["bk"], lp["bv"]])[None, :]
                      for lp in layers])                              # (L, 1, 3D)
    wo = stack("Wo", (D, D), jnp.bfloat16);  bo = stack("bo", (1, D))
    ln2w = stack("ln2_w", (1, D));  ln2b = stack("ln2_b", (1, D))
    w1 = stack("w1", (D, F), jnp.bfloat16);  b1 = stack("b1", (1, F))
    w2 = stack("w2", (F, D), jnp.bfloat16);  b2 = stack("b2", (1, D))

    pre_w = params["pre_ln_w"].reshape(1, D)
    pre_b = params["pre_ln_b"].reshape(1, D)

    def per_layer(shape):
        # one layer's weight block per L-grid step (constant across batch axis)
        return pl.BlockSpec((1,) + shape,
                            lambda b, l, _n=len(shape): (l,) + (0,) * _n)

    kernel = functools.partial(_encoder_stack_kernel,
                               num_heads=num_heads, scale=scale)
    return pl.pallas_call(
        kernel,
        grid=(B, L),
        out_shape=jax.ShapeDtypeStruct((B, S, D), jnp.float32),
        in_specs=[
            pl.BlockSpec((1, S, D), lambda b, l: (b, 0, 0)),    # x (fetched once / b)
            pl.BlockSpec((1, D), lambda b, l: (0, 0)),          # pre-LN w
            pl.BlockSpec((1, D), lambda b, l: (0, 0)),          # pre-LN b
            per_layer((1, D)), per_layer((1, D)),               # ln1
            per_layer((D, 3 * D)), per_layer((1, 3 * D)),       # fused qkv proj
            per_layer((D, D)), per_layer((1, D)),               # out proj
            per_layer((1, D)), per_layer((1, D)),               # ln2
            per_layer((D, F)), per_layer((1, F)),               # fc1
            per_layer((F, D)), per_layer((1, D)),               # fc2
        ],
        out_specs=pl.BlockSpec((1, S, D), lambda b, l: (b, 0, 0)),
        compiler_params=pltpu.CompilerParams(
            dimension_semantics=("parallel", "arbitrary"),
            vmem_limit_bytes=VMEM_LIMIT_BYTES),
    )(x, pre_w, pre_b, ln1w, ln1b, wqkv, bqkv, wo, bo,
      ln2w, ln2b, w1, b1, w2, b2)


# --------------------------------- glue ---------------------------------------
def im2col(pixel_values, p):
    # NCHW -> (B, num_patches, C*p*p), patch order row-major == Conv2d flatten(2)
    B, C, H, W = pixel_values.shape
    gh, gw = H // p, W // p
    x = pixel_values.reshape(B, C, gh, p, gw, p)
    x = x.transpose(0, 2, 4, 1, 3, 5)              # (B, gh, gw, C, p, p)
    return x.reshape(B, gh * gw, C * p * p)


def clip_vision_forward(pixel_values, params, cfg):
    p, D, H = cfg["patch_size"], cfg["hidden"], cfg["heads"]
    B = pixel_values.shape[0]
    patches = im2col(pixel_values, p)                              # (B, N, Cpp)
    N = patches.shape[1]
    tok = patch_embed(patches.reshape(B * N, -1), params["patch_w"])
    tok = tok.reshape(B, N, D)
    cls = jnp.broadcast_to(params["class_emb"][None, None, :], (B, 1, D))
    x = jnp.concatenate([cls, tok], axis=1) + params["pos_emb"][None]  # (B, S, D)
    # pre-LN + all encoder layers fused into one pallas_call
    return encoder_stack(x, params, H)  # last_hidden_state (no post_layernorm)


# ------------------------------ params / reference ----------------------------
def init_params(key, cfg):
    C, p, D = cfg["channels"], cfg["patch_size"], cfg["hidden"]
    L, F = cfg["layers"], cfg["mlp"]
    S = (cfg["image_size"] // p) ** 2 + 1
    std = 0.02
    keys = jax.random.split(key, 3 + L)
    params = {
        "patch_w": std * jax.random.normal(keys[0], (C * p * p, D), jnp.float32),
        "class_emb": std * jax.random.normal(keys[1], (D,), jnp.float32),
        "pos_emb": std * jax.random.normal(keys[2], (S, D), jnp.float32),
        "pre_ln_w": jnp.ones((D,), jnp.float32),
        "pre_ln_b": jnp.zeros((D,), jnp.float32),
        "layers": [],
    }
    for l in range(L):
        ks = jax.random.split(keys[3 + l], 7)
        params["layers"].append({
            "ln1_w": jnp.ones((D,), jnp.float32), "ln1_b": jnp.zeros((D,), jnp.float32),
            "Wq": std * jax.random.normal(ks[0], (D, D), jnp.float32),
            "bq": std * jax.random.normal(ks[1], (D,), jnp.float32),
            "Wk": std * jax.random.normal(ks[2], (D, D), jnp.float32),
            "bk": jnp.zeros((D,), jnp.float32),
            "Wv": std * jax.random.normal(ks[3], (D, D), jnp.float32),
            "bv": jnp.zeros((D,), jnp.float32),
            "Wo": std * jax.random.normal(ks[4], (D, D), jnp.float32),
            "bo": jnp.zeros((D,), jnp.float32),
            "ln2_w": jnp.ones((D,), jnp.float32), "ln2_b": jnp.zeros((D,), jnp.float32),
            "w1": std * jax.random.normal(ks[5], (D, F), jnp.float32),
            "b1": jnp.zeros((F,), jnp.float32),
            "w2": std * jax.random.normal(ks[6], (F, D), jnp.float32),
            "b2": jnp.zeros((D,), jnp.float32),
        })
    return params


def _ref_ln(x, w, b):
    mu = jnp.mean(x, axis=-1, keepdims=True)
    var = jnp.mean((x - mu) ** 2, axis=-1, keepdims=True)
    return (x - mu) * jax.lax.rsqrt(var + EPS) * w + b


def reference_forward(pixel_values, params, cfg):
    p, D, H = cfg["patch_size"], cfg["hidden"], cfg["heads"]
    B = pixel_values.shape[0]
    hd = D // H
    tok = im2col(pixel_values, p) @ params["patch_w"]
    cls = jnp.broadcast_to(params["class_emb"][None, None, :], (B, 1, D))
    x = jnp.concatenate([cls, tok], axis=1) + params["pos_emb"][None]
    x = _ref_ln(x, params["pre_ln_w"], params["pre_ln_b"])
    S = x.shape[1]
    for lp in params["layers"]:
        h = _ref_ln(x, lp["ln1_w"], lp["ln1_b"])
        split = lambda t: t.reshape(B, S, H, hd).transpose(0, 2, 1, 3)
        q = split(h @ lp["Wq"] + lp["bq"]) * (hd ** -0.5)
        k = split(h @ lp["Wk"] + lp["bk"])
        v = split(h @ lp["Wv"] + lp["bv"])
        pattn = jax.nn.softmax(jnp.einsum("bhqd,bhkd->bhqk", q, k), axis=-1)
        o = jnp.einsum("bhqk,bhkd->bhqd", pattn, v).transpose(0, 2, 1, 3).reshape(B, S, D)
        x = x + (o @ lp["Wo"] + lp["bo"])
        h2 = _ref_ln(x, lp["ln2_w"], lp["ln2_b"])
        f = h2 @ lp["w1"] + lp["b1"]
        f = f * jax.nn.sigmoid(1.702 * f)
        x = x + (f @ lp["w2"] + lp["b2"])
    return x


if __name__ == "__main__":
    # Toy config with lane-dense hidden dim (D=128) and real CLIP head dim (64).
    cfg = dict(image_size=32, patch_size=8, channels=3,
               hidden=128, heads=2, layers=2, mlp=256)
    key = jax.random.PRNGKey(0)
    kp, kx = jax.random.split(key)
    params = init_params(kp, cfg)

    B = 2
    pixel_values = jax.random.normal(kx, (B, cfg["channels"],
                                          cfg["image_size"], cfg["image_size"]),
                                     jnp.float32)

    out = clip_vision_forward(pixel_values, params, cfg)
    out = jax.block_until_ready(out)

    S = (cfg["image_size"] // cfg["patch_size"]) ** 2 + 1
    assert out.shape == (B, S, cfg["hidden"]), out.shape
    assert jnp.all(jnp.isfinite(out))

    ref = reference_forward(pixel_values, params, cfg)
    max_err = float(jnp.max(jnp.abs(out - ref)))
    # Encoder matmuls run with bf16 operands (f32 accumulation) + approx
    # reciprocal in softmax, so allow a bf16-sized tolerance vs f32 reference.
    assert max_err < 3e-2, f"mismatch vs reference: {max_err}"

    print("KERNEL_OK")
</pallas_src>

<mosaic_0001>
module attributes {stable_mosaic.version = 11 : i64} {
  func.func @_patch_embed_kernel(%arg0: i32, %arg1: memref<32x256xf32, #tpu.memory_space<vmem>>, %arg2: memref<256x128xf32, #tpu.memory_space<vmem>>, %arg3: memref<32x128xf32, #tpu.memory_space<vmem>>) attributes {dimension_semantics = [#tpu.dimension_semantics<parallel>], iteration_bounds = array<i64: 1>, scalar_prefetch = 0 : i64, scratch_operands = 0 : i64, tpu.core_type = #tpu.core_type<tc>, window_params = [{transform_indices = @transform_0, window_bounds = array<i64: 32, 256>}, {pipeline_mode = #tpu.pipeline_mode<synchronous>, transform_indices = @transform_1, window_bounds = array<i64: 256, 128>}, {transform_indices = @transform_2, window_bounds = array<i64: 32, 128>}]} {
    %c0 = arith.constant 0 : index
    %c0_0 = arith.constant 0 : index
    %0 = vector.load %arg1[%c0, %c0_0] : memref<32x256xf32, #tpu.memory_space<vmem>>, vector<32x256xf32>
    %c0_1 = arith.constant 0 : index
    %c0_2 = arith.constant 0 : index
    %1 = vector.load %arg2[%c0_1, %c0_2] : memref<256x128xf32, #tpu.memory_space<vmem>>, vector<256x128xf32>
    %cst = arith.constant dense<0.000000e+00> : vector<32x128xf32>
    %2 = tpu.matmul %0, %1, %cst {dimension_numbers = #tpu.dot_dimension_numbers<[1], [0], [0], [1], [0, 0, 1, 1], [], []>} : vector<32x256xf32>, vector<256x128xf32>, vector<32x128xf32> -> vector<32x128xf32>
    %c0_3 = arith.constant 0 : index
    %c0_4 = arith.constant 0 : index
    %3 = vector.load %arg3[%c0_3, %c0_4] : memref<32x128xf32, #tpu.memory_space<vmem>>, vector<32x128xf32>
    tpu.vector_store %arg3[%c0_3, %c0_4], %2 {strides = array<i32>} : memref<32x128xf32, #tpu.memory_space<vmem>>, vector<32x128xf32>,
    return
  }
  func.func @transform_0(%arg0: i32) -> (i32, i32) {
    %c0_i32 = arith.constant 0 : i32
    %c0_i32_0 = arith.constant 0 : i32
    return %arg0, %c0_i32 : i32, i32
  }
  func.func @transform_1(%arg0: i32) -> (i32, i32) {
    %c0_i32 = arith.constant 0 : i32
    %c0_i32_0 = arith.constant 0 : i32
    %c0_i32_1 = arith.constant 0 : i32
    return %c0_i32, %c0_i32_0 : i32, i32
  }
  func.func @transform_2(%arg0: i32) -> (i32, i32) {
    %c0_i32 = arith.constant 0 : i32
    %c0_i32_0 = arith.constant 0 : i32
    return %arg0, %c0_i32 : i32, i32
  }
}

</mosaic_0001>

<bundles_post_ra>
// kernel: tpu_custom_call.1
= control target key start
LH: loop header
LB: loop body
LE: loop exit
PB: predicated region body
PF: predicated region fallthrough
CT: control target
= control target key end

     0   :  { %7 = vsyncpa [#allocation3], 0  ;;  %s320_s0 = inlined_call_operand.hbm [shape: f32[32,256], index: 0, kind: input, shape index: {}]   ;;  %s321_s1 = inlined_call_operand.hbm [shape: f32[256,128], index: 1, kind: input, shape index: {}]   ;;  %s322_s2 = inlined_call_operand.hbm [shape: f32[32,128], index: 2, kind: output, shape index: {}]  }
   0x1   :  { %8 = vsyncpa [#allocation6], 0 }
   0x2   :  { %9 = vsyncpa [#allocation4], 0  ;;  %s14_s11 = sshll.u32 %s320_s0, 4  ;;  %s283_s12 = smov [#allocation2]   ;;  %s15_s11 = int_to_ptr.hbm [resolvable:$true] %s14_s11 }
   0x3   :  { %s16_s13 = sshll.u32 %s283_s12, 4  ;;  %s27_s16 = sshll.u32 %s321_s1, 4  ;;  %s17_s13 = int_to_ptr.vmem [resolvable:$true] %s16_s13  ;;  %s28_s16 = int_to_ptr.hbm [resolvable:$true] %s27_s16 }
   0x4   :  { %s284_s17 = smov 256   ;;  %s285_s18 = smov 16  }
   0x5   :  { %22 = dma.hbm_to_vmem [thread:$0]  %s15_s11, 1024, %s17_s13, [#allocation3], %s284_s17, %s284_s17, %s285_s18  }
   0x6   :  { %s286_s19 = smov [#allocation5]   ;;  %s287_s21 = smov 128  }
   0x7   :  { %s29_s20 = sshll.u32 %s286_s19, 4  ;;  %s288_s22 = smov 8   ;;  %s30_s20 = int_to_ptr.vmem [resolvable:$true] %s29_s20 }
   0x8   :  { %35 = dma.hbm_to_vmem [thread:$0]  %s28_s16, 4096, %s30_s20, [#allocation6], %s287_s21, %s287_s21, %s288_s22  }
   0x9   :  { %277 = dma.done.wait [#allocation3], 1024  }
   0xa   :  { %278 = vsyncadd [#allocation3], 4294966272 }
   0xb   :  { %279 = dma.done.wait [#allocation6], 4096  }
   0xc   :  { %280 = vsyncadd [#allocation6], 4294963200  ;;  %v67_v0 = vld [vmem:[#allocation5 + $0x78] sm:$0xff]  ;;  %v66_v2 = vld [vmem:[#allocation5 + $0x70] sm:$0xff]  ;;  %s289_s0 = smov [#allocation7]   ;;  %s152_s25 = sshll.u32 %s322_s2, 4  ;;  %s153_s25 = int_to_ptr.hbm [resolvable:$true] %s152_s25 }
   0xd   :  { %v83_v1 = vld [vmem:[#allocation5 + $0xf8] sm:$0xff]  ;;  %166 = vmatpush.msra.mxu2 %v67_v0  ;;  %v82_v3 = vld [vmem:[#allocation5 + $0xf0] sm:$0xff]  ;;  %v65_v4 = vld [vmem:[#allocation5 + $0x68] sm:$0xff]  ;;  %84 = vmatpush.msra.mxu0 %v67_v0  ;;  %s150_s1 = sshll.u32 %s289_s0, 4  ;;  %s151_s1 = int_to_ptr.vmem [resolvable:$true] %s150_s1 }
   0xe   :  { %182 = vmatpush.msra.mxu3 %v83_v1  ;;  %v81_v5 = vld [vmem:[#allocation5 + $0xe8] sm:$0xff]  ;;  %113 = vmatpush.msra.mxu1 %v83_v1  ;;  %v64_v6 = vld [vmem:[#allocation5 + $0x60] sm:$0xff]  ;;  %v63_v8 = vld [vmem:[#allocation5 + $0x58] sm:$0xff] }
   0xf   :  { %167 = vmatpush.msra.mxu2 %v66_v2  ;;  %v80_v7 = vld [vmem:[#allocation5 + $0xe0] sm:$0xff]  ;;  %85 = vmatpush.msra.mxu0 %v66_v2  ;;  %v79_v9 = vld [vmem:[#allocation5 + $0xd8] sm:$0xff]  ;;  %v62_v10 = vld [vmem:[#allocation5 + $0x50] sm:$0xff] }
  0x10   :  { %183 = vmatpush.msra.mxu3 %v82_v3  ;;  %114 = vmatpush.msra.mxu1 %v82_v3  ;;  %v78_v11 = vld [vmem:[#allocation5 + $0xd0] sm:$0xff]  ;;  %v61_v12 = vld [vmem:[#allocation5 + $0x48] sm:$0xff]  ;;  %v60_v14 = vld [vmem:[#allocation5 + $0x40] sm:$0xff] }
  0x11   :  { %168 = vmatpush.msra.mxu2 %v65_v4  ;;  %86 = vmatpush.msra.mxu0 %v65_v4  ;;  %v77_v13 = vld [vmem:[#allocation5 + $0xc8] sm:$0xff]  ;;  %v76_v15 = vld [vmem:[#allocation5 + $0xc0] sm:$0xff]  ;;  %v59_v16 = vld [vmem:[#allocation5 + $0x38] sm:$0xff] }
  0x12   :  { %184 = vmatpush.msra.mxu3 %v81_v5  ;;  %115 = vmatpush.msra.mxu1 %v81_v5  ;;  %v75_v17 = vld [vmem:[#allocation5 + $0xb8] sm:$0xff]  ;;  %v58_v18 = vld [vmem:[#allocation5 + $0x30] sm:$0xff]  ;;  %v57_v20 = vld [vmem:[#allocation5 + $0x28] sm:$0xff] }
  0x13   :  { %169 = vmatpush.msra.mxu2 %v64_v6  ;;  %87 = vmatpush.msra.mxu0 %v64_v6  ;;  %v74_v19 = vld [vmem:[#allocation5 + $0xb0] sm:$0xff]  ;;  %v73_v21 = vld [vmem:[#allocation5 + $0xa8] sm:$0xff]  ;;  %v56_v22 = vld [vmem:[#allocation5 + $0x20] sm:$0xff] }
  0x14   :  { %185 = vmatpush.msra.mxu3 %v80_v7  ;;  %116 = vmatpush.msra.mxu1 %v80_v7  ;;  %v72_v23 = vld [vmem:[#allocation5 + $0xa0] sm:$0xff]  ;;  %v55_v24 = vld [vmem:[#allocation5 + $0x18] sm:$0xff]  ;;  %v54_v26 = vld [vmem:[#allocation5 + $0x10] sm:$0xff] }
  0x15   :  { %170 = vmatpush.msra.mxu2 %v63_v8  ;;  %88 = vmatpush.msra.mxu0 %v63_v8  ;;  %v71_v25 = vld [vmem:[#allocation5 + $0x98] sm:$0xff]  ;;  %v70_v27 = vld [vmem:[#allocation5 + $0x90] sm:$0xff]  ;;  %v53_v28 = vld [vmem:[#allocation5 + $0x8] sm:$0xff] }
  0x16   :  { %186 = vmatpush.msra.mxu3 %v79_v9  ;;  %117 = vmatpush.msra.mxu1 %v79_v9  ;;  %v69_v29 = vld [vmem:[#allocation5 + $0x88] sm:$0xff]  ;;  %v52_v30 = vld [vmem:[#allocation5] sm:$0xff]  ;;  %v50_v36 = vld [vmem:[#allocation2 + $0x30] sm:$0xff] }
  0x17   :  { %171 = vmatpush.msra.mxu2 %v62_v10  ;;  %89 = vmatpush.msra.mxu0 %v62_v10  ;;  %v68_v31 = vld [vmem:[#allocation5 + $0x80] sm:$0xff]  ;;  %v49_v33 = vld [vmem:[#allocation2 + $0x28] sm:$0xff]  ;;  %v51_v37 = vld [vmem:[#allocation2 + $0x38] sm:$0xff] }
  0x18   :  { %187 = vmatpush.msra.mxu3 %v78_v11  ;;  %118 = vmatpush.msra.mxu1 %v78_v11  ;;  %v48_v32 = vld [vmem:[#allocation2 + $0x20] sm:$0xff]  ;;  %v45_v35 = vld [vmem:[#allocation2 + $0x8] sm:$0xff]  ;;  %v46_v38 = vld [vmem:[#allocation2 + $0x10] sm:$0xff] }
  0x19   :  { %172 = vmatpush.msra.mxu2 %v61_v12  ;;  %90 = vmatpush.msra.mxu0 %v61_v12  ;;  %v44_v34 = vld [vmem:[#allocation2] sm:$0xff]  ;;  %v47_v39 = vld [vmem:[#allocation2 + $0x18] sm:$0xff] }
  0x1a   :  { %188 = vmatpush.msra.mxu3 %v77_v13  ;;  %119 = vmatpush.msra.mxu1 %v77_v13 }
  0x1b   :  { %173 = vmatpush.msra.mxu2 %v60_v14  ;;  %91 = vmatpush.msra.mxu0 %v60_v14 }
  0x1c   :  { %189 = vmatpush.msra.mxu3 %v76_v15  ;;  %120 = vmatpush.msra.mxu1 %v76_v15 }
  0x1d   :  { %174 = vmatpush.msra.mxu2 %v59_v16  ;;  %92 = vmatpush.msra.mxu0 %v59_v16 }
  0x1e   :  { %190 = vmatpush.msra.mxu3 %v75_v17  ;;  %121 = vmatpush.msra.mxu1 %v75_v17 }
  0x1f   :  { %175 = vmatpush.msra.mxu2 %v58_v18  ;;  %93 = vmatpush.msra.mxu0 %v58_v18 }
  0x20   :  { %191 = vmatpush.msra.mxu3 %v74_v19  ;;  %122 = vmatpush.msra.mxu1 %v74_v19 }
  0x21   :  { %176 = vmatpush.msra.mxu2 %v57_v20  ;;  %94 = vmatpush.msra.mxu0 %v57_v20 }
  0x22   :  { %192 = vmatpush.msra.mxu3 %v73_v21  ;;  %123 = vmatpush.msra.mxu1 %v73_v21 }
  0x23   :  { %177 = vmatpush.msra.mxu2 %v56_v22  ;;  %95 = vmatpush.msra.mxu0 %v56_v22 }
  0x24   :  { %193 = vmatpush.msra.mxu3 %v72_v23  ;;  %124 = vmatpush.msra.mxu1 %v72_v23 }
  0x25   :  { %178 = vmatpush.msra.mxu2 %v55_v24  ;;  %96 = vmatpush.msra.mxu0 %v55_v24 }
  0x26   :  { %194 = vmatpush.msra.mxu3 %v71_v25  ;;  %125 = vmatpush.msra.mxu1 %v71_v25 }
  0x27   :  { %179 = vmatpush.msra.mxu2 %v54_v26  ;;  %97 = vmatpush.msra.mxu0 %v54_v26 }
  0x28   :  { %195 = vmatpush.msra.mxu3 %v70_v27  ;;  %126 = vmatpush.msra.mxu1 %v70_v27 }
  0x29   :  { %180 = vmatpush.msra.mxu2 %v53_v28  ;;  %98 = vmatpush.msra.mxu0 %v53_v28 }
  0x2a   :  { %196 = vmatpush.msra.mxu3 %v69_v29  ;;  %127 = vmatpush.msra.mxu1 %v69_v29 }
  0x2b   :  { %181 = vmatpush.msra.mxu2 %v52_v30  ;;  %99 = vmatpush.msra.mxu0 %v52_v30 }
  0x2c   :  { %197 = vmatpush.msra.mxu3 %v68_v31  ;;  %106 = vmatmul.f32.vlgmr.msra.gmra.mxu2 %v48_v32 }
  0x2d   :  { %135 = vmatmul.f32.vlgmr.msra.gmra.mxu3 %v49_v33  ;;  %128 = vmatpush.msra.mxu1 %v68_v31 }
  0x2e   :  { %100 = vmatmul.f32.vlgmr.msra.gmra.mxu0 %v44_v34  ;;  %129 = vmatmul.f32.vlgmr.msra.gmra.mxu1 %v45_v35 }
  0x34   :  { %109 = vmatmul.f32.gmra.mxu2 %v50_v36 }
  0x35   :  { %138 = vmatmul.f32.gmra.mxu3 %v51_v37 }
  0x36   :  { %103 = vmatmul.f32.gmra.mxu0 %v46_v38  ;;  %132 = vmatmul.f32.gmra.mxu1 %v47_v39 }
  0xab   :  { %v101_v40 = vpop.f32.mrf.mxu0  ;;  %v130_v41 = vpop.f32.mrf.mxu1 }
  0xac   :  { %v131_v42 = vadd.f32 %v130_v41, %v101_v40 }
  0xae   :  { %142 = vst [vmem:[#allocation7] sm:$0xff] %v131_v42 }
  0xaf   :  { %v107_v43 = vpop.f32.mrf.mxu2 }
  0xb0   :  { %v136_v44 = vpop.f32.mrf.mxu3 }
  0xb1   :  { %v137_v45 = vadd.f32 %v136_v44, %v107_v43 }
  0xb3   :  { %144 = vst [vmem:[#allocation7 + $0x10] sm:$0xff] %v137_v45  ;;  %v104_v46 = vpop.f32.mrf.mxu0  ;;  %v133_v47 = vpop.f32.mrf.mxu1 }
  0xb4   :  { %v134_v48 = vadd.f32 %v133_v47, %v104_v46 }
  0xb6   :  { %143 = vst [vmem:[#allocation7 + $0x8] sm:$0xff] %v134_v48 }
  0xb7   :  { %v110_v49 = vpop.f32.mrf.mxu2 }
  0xb8   :  { %v139_v50 = vpop.f32.mrf.mxu3 }
  0xb9   :  { %v140_v51 = vadd.f32 %v139_v50, %v110_v49 }
  0xbb   :  { %145 = vst [vmem:[#allocation7 + $0x18] sm:$0xff] %v140_v51 }
  0xbc   :  { %158 = dma.vmem_to_hbm [thread:$0]  %s151_s1, 512, %s153_s25, [#allocation4], %s287_s21, %s287_s21, %s288_s22  }
  0xbd   :  { %281 = dma.done.wait [#allocation4], 512  }
  0xbe   :  { %282 = vsyncadd [#allocation4], 4294966784 }
  0xbf   :  { %163 = vsyncpa [#allocation3], 1 }
  0xc0   :  { %164 = vsyncpa [#allocation6], 1 }
  0xc1   :  { %165 = vsyncpa [#allocation4], 1 }

</bundles_post_ra>
